<compile_context>
chip_gen: v7x
topology: tpu7x:2x2x1
jax: 0.10.0
libtpu: 0.0.40
codegen_flags: <defaults>
</compile_context>

<pallas_src>
import functools

import jax
import jax.numpy as jnp
from jax.experimental import pallas as pl
from jax.experimental.pallas import tpu as pltpu

_LANE = 128
_MASKED = -1.0e4      # finite "minus infinity": exp(-1e4 - m) underflows to 0 in f32
_EXP_CLAMP = -100.0   # keep every exp argument in a hardware-safe range


def _round_up(v, m):
    return ((v + m - 1) // m) * m


def _choose_row_tile(n, budget_bytes=8 * 1024 * 1024):
    """Largest row tile dividing n whose double-buffered att/alpha/mask streams
    stay inside a conservative VMEM budget (safe for default scoped limits)."""
    for tq in (2048, 1024, 512, 256, 128, 64, 32, 16, 8):
        if n % tq == 0 and 2 * tq * n * (4 + 4 + 2) <= budget_bytes:
            return tq
    return n  # TODO(synk): for huge non-divisible N, pad N or use a cdiv grid.


def _gcn_layer_kernel(x_ref, w_ref, b_ref, att_ref, nmask_ref,
                      o_ref, alpha_ref, y_ref, *, apply_relu):
    # grid = (H, R).  Per step:
    #   x_ref    : (1, N, Fp_in)      w_ref    : (1, Fp_in, Fp_out)
    #   b_ref    : (1, 1, Fp_out)     att_ref  : (1, TQ, N)
    #   nmask_ref: (TQ, N) bf16 0/1 adjacency indicator
    #   o_ref    : (1, TQ, Fp_out)    alpha_ref: (1, TQ, N)
    #   y_ref    : (N, Fp_out) bf16 scratch, persistent across row tiles
    @pl.when(pl.program_id(1) == 0)
    def _():
        # per-head linear, computed once per head and cached in VMEM
        y = jnp.dot(x_ref[0].astype(jnp.bfloat16),
                    w_ref[0].astype(jnp.bfloat16),
                    preferred_element_type=jnp.float32) + b_ref[0]
        y_ref[...] = y.astype(jnp.bfloat16)

    att = att_ref[0]                                      # (TQ, N) f32
    leaky = jnp.where(att > 0, att, 0.2 * att)            # LeakyReLU(0.2)
    neigh = nmask_ref[...].astype(jnp.float32) > 0.0      # adjacency mask
    score = jnp.where(neigh, leaky, _MASKED)

    # exact row-wise softmax (rows never split across tiles); all exp arguments
    # are clamped into a safe range and the normalization is an exact divide.
    m = jnp.max(score, axis=-1, keepdims=True)
    e = jnp.exp(jnp.maximum(score - m, _EXP_CLAMP))
    denom = jnp.sum(e, axis=-1, keepdims=True)
    alpha = e * (1.0 / denom)

    # neighborhood aggregation on the MXU (bf16 operands, f32 accumulation)
    out = jnp.dot(alpha.astype(jnp.bfloat16), y_ref[...],
                  preferred_element_type=jnp.float32)
    if apply_relu:
        out = jnp.maximum(out, 0.0)

    o_ref[0] = out
    alpha_ref[0] = alpha


def gcn_layer(x, w, b, att, nmask, apply_relu):
    """One GCNLayer.
       x: (H, N, Fp_in) f32, w: (H, Fp_in, Fp_out) f32, b: (H, 1, Fp_out) f32,
       att: (H, N, N) f32, nmask: (N, N) bf16 0/1 adjacency indicator.
       Returns (out (H, N, Fp_out) f32, alpha (H, N, N) f32)."""
    H, N, Fin = x.shape
    Fout = w.shape[-1]
    tq = _choose_row_tile(N)
    grid = (H, N // tq)

    cost = pl.CostEstimate(
        flops=int(2 * H * N * Fin * Fout + 2 * H * N * N * Fout + 8 * H * N * N),
        transcendentals=int(H * N * N),
        bytes_accessed=int(x.size * 4 + w.size * 4 + b.size * 4 + att.size * 4
                           + nmask.size * 2 + H * N * Fout * 4 + H * N * N * 4),
    )

    kern = functools.partial(_gcn_layer_kernel, apply_relu=apply_relu)
    out, alpha = pl.pallas_call(
        kern,
        grid=grid,
        in_specs=[
            pl.BlockSpec((1, N, Fin), lambda h, r: (h, 0, 0)),      # x (per head)
            pl.BlockSpec((1, Fin, Fout), lambda h, r: (h, 0, 0)),   # W (per head)
            pl.BlockSpec((1, 1, Fout), lambda h, r: (h, 0, 0)),     # b (per head)
            pl.BlockSpec((1, tq, N), lambda h, r: (h, r, 0)),       # att row tile
            pl.BlockSpec((tq, N), lambda h, r: (r, 0)),             # adj mask tile
        ],
        out_specs=[
            pl.BlockSpec((1, tq, Fout), lambda h, r: (h, r, 0)),    # out (lane-dense)
            pl.BlockSpec((1, tq, N), lambda h, r: (h, r, 0)),       # alpha
        ],
        out_shape=[
            jax.ShapeDtypeStruct((H, N, Fout), jnp.float32),
            jax.ShapeDtypeStruct((H, N, N), jnp.float32),
        ],
        scratch_shapes=[pltpu.VMEM((N, Fout), jnp.bfloat16)],
        compiler_params=pltpu.CompilerParams(
            dimension_semantics=("parallel", "arbitrary")),
        cost_estimate=cost,
    )(x, w, b, att, nmask)
    return out, alpha


def _xavier_uniform(key, shape, fan_in, fan_out):
    bound = (6.0 / (fan_in + fan_out)) ** 0.5
    return jax.random.uniform(key, shape, jnp.float32, -bound, bound)


def init_gcn_block(key, n_layer, in_dim, hidden_dim, out_dim, num_head, n_nodes):
    """Parameters at the PyTorch module's logical shapes, zero-padded so every
    feature dim is a multiple of 128 (well-shaped MXU operands, lane-dense
    stores).  Zero padding keeps padded feature columns exactly zero through
    all layers, so results are identical after the final slice."""
    params = []
    for i in range(n_layer):
        lin = in_dim if i == 0 else hidden_dim // (2 * i)
        lout = out_dim if i == n_layer - 1 else hidden_dim // (2 * (i + 1))
        fp_in, fp_out = _round_up(lin, _LANE), _round_up(lout, _LANE)
        key, kw, kb, ka = jax.random.split(key, 4)
        # nn.Linear weight (xavier_uniform) stored already transposed: (Fin, Fout)
        W = _xavier_uniform(kw, (num_head, lin, lout), lin, lout)
        # nn.Linear default bias init: U(-1/sqrt(fan_in), 1/sqrt(fan_in))
        bb = 1.0 / (lin ** 0.5)
        b = jax.random.uniform(kb, (num_head, 1, lout), jnp.float32, -bb, bb)
        # fixed attention pattern per head, xavier_uniform (N, N)
        att = _xavier_uniform(ka, (num_head, n_nodes, n_nodes), n_nodes, n_nodes)
        W_p = jnp.zeros((num_head, fp_in, fp_out), jnp.float32).at[:, :lin, :lout].set(W)
        b_p = jnp.zeros((num_head, 1, fp_out), jnp.float32).at[:, :, :lout].set(b)
        params.append(dict(W=W_p, b=b_p, att=att, relu=(i != n_layer - 1),
                           fin=lin, fout=lout))
    return params


def gcn_block_forward(params, x, adj):
    """x: (num_head, N, in_dim) f32, adj: (N, N).  Returns (out, adj, alphas)."""
    H, N, fin0 = x.shape
    # 0/1 adjacency indicator, computed once and shared by every layer / head.
    nmask = (adj > 0).astype(jnp.bfloat16)
    # zero-pad input features to the lane-dense padded width of layer 0
    fp0 = params[0]["W"].shape[1]
    h = jnp.zeros((H, N, fp0), jnp.float32).at[:, :, :fin0].set(x)

    layers_alphalist = []
    for p in params:
        h, alpha = gcn_layer(h, p["W"], p["b"], p["att"], nmask, p["relu"])
        layers_alphalist.append(alpha)
    out = h[:, :, :params[-1]["fout"]]   # drop the zero padding columns
    return out, adj, layers_alphalist


def gcn_block_reference(params, x, adj):
    """Pure-JAX reference mirroring the PyTorch forward (eval mode)."""
    neg = -9.0e15
    h = x
    alphas = []
    for p in params:
        W = p["W"][:, :p["fin"], :p["fout"]]
        b = p["b"][:, :, :p["fout"]]
        y = jnp.einsum("hnf,hfo->hno", h, W) + b
        leaky = jnp.where(p["att"] > 0, p["att"], 0.2 * p["att"])
        score = jnp.where(adj[None, :, :] > 0, leaky, neg)
        alpha = jax.nn.softmax(score, axis=-1)
        out = jnp.einsum("hqn,hno->hqo", alpha, y)
        if p["relu"]:
            out = jnp.maximum(out, 0.0)
        h = out
        alphas.append(alpha)
    return h, alphas


if __name__ == "__main__":
    # Small synthetic configuration consistent with GCNBlock(__init__):
    n_layer, num_head = 2, 2
    in_dim, hidden_dim, out_dim = 8, 16, 4
    n_nodes = 16

    key = jax.random.PRNGKey(0)
    key, kx = jax.random.split(key)
    # x: (num_head, N, in_dim) — one feature slab per head, as the PyTorch
    # forward chunks x along dim 0.
    x = jax.random.normal(kx, (num_head, n_nodes, in_dim), jnp.float32)

    # Deterministic adjacency: ring graph with self loops (every row has 3 ones).
    eye = jnp.eye(n_nodes, dtype=jnp.float32)
    adj = jnp.clip(eye + jnp.roll(eye, 1, axis=1) + jnp.roll(eye, -1, axis=1),
                   0.0, 1.0)

    params = init_gcn_block(key, n_layer, in_dim, hidden_dim, out_dim,
                            num_head, n_nodes)

    out, adj_out, layers_alphalist = gcn_block_forward(params, x, adj)
    out = jax.block_until_ready(out)
    layers_alphalist = [jax.block_until_ready(a) for a in layers_alphalist]

    # pure-JAX reference for correctness
    out_ref, alphas_ref = gcn_block_reference(params, x, adj)
    out_ref = jax.block_until_ready(out_ref)

    assert out.shape == (num_head, n_nodes, out_dim)
    assert len(layers_alphalist) == n_layer
    assert layers_alphalist[0].shape == (num_head, n_nodes, n_nodes)
    # attention rows must sum to 1 (softmax over masked neighborhood)
    row_sums = jnp.sum(layers_alphalist[0], axis=-1)
    assert bool(jnp.all(jnp.abs(row_sums - 1.0) < 2e-3)), "alpha rows must sum to 1"
    # match the reference forward (alpha path is pure f32; out path uses bf16 MXU)
    for a, a_ref in zip(layers_alphalist, alphas_ref):
        assert bool(jnp.max(jnp.abs(a - a_ref)) < 2e-3), "alpha mismatch vs reference"
    assert bool(jnp.max(jnp.abs(out - out_ref)) < 1e-1), "output mismatch vs reference"
    print("KERNEL_OK")
</pallas_src>

<mosaic_0001>
module attributes {stable_mosaic.version = 11 : i64} {
  func.func @_gcn_layer_kernel(%arg0: i32, %arg1: i32, %arg2: memref<1x16x128xf32, #tpu.memory_space<vmem>>, %arg3: memref<1x128x128xf32, #tpu.memory_space<vmem>>, %arg4: memref<1x1x128xf32, #tpu.memory_space<vmem>>, %arg5: memref<1x16x16xf32, #tpu.memory_space<vmem>>, %arg6: memref<16x16xbf16, #tpu.memory_space<vmem>>, %arg7: memref<1x16x128xf32, #tpu.memory_space<vmem>>, %arg8: memref<1x16x16xf32, #tpu.memory_space<vmem>>, %arg9: memref<16x128xbf16, #tpu.memory_space<vmem>>) attributes {dimension_semantics = [#tpu.dimension_semantics<parallel>, #tpu.dimension_semantics<arbitrary>], iteration_bounds = array<i64: 2, 1>, scalar_prefetch = 0 : i64, scratch_operands = 1 : i64, tpu.core_type = #tpu.core_type<tc>, window_params = [{transform_indices = @transform_0, window_bounds = array<i64: 1, 16, 128>}, {transform_indices = @transform_1, window_bounds = array<i64: 1, 128, 128>}, {transform_indices = @transform_2, window_bounds = array<i64: 1, 1, 128>}, {transform_indices = @transform_3, window_bounds = array<i64: 1, 16, 16>}, {transform_indices = @transform_4, window_bounds = array<i64: 16, 16>}, {transform_indices = @transform_5, window_bounds = array<i64: 1, 16, 128>}, {transform_indices = @transform_6, window_bounds = array<i64: 1, 16, 16>}]} {
    %c0_i32 = arith.constant 0 : i32
    %0 = arith.cmpi eq, %arg1, %c0_i32 : i32
    %1 = arith.extui %0 : i1 to i32
    %c0_i32_0 = arith.constant 0 : i32
    %2 = arith.cmpi ne, %1, %c0_i32_0 : i32
    scf.if %2 {
      %c0_22 = arith.constant 0 : index
      %c0_23 = arith.constant 0 : index
      %c0_24 = arith.constant 0 : index
      %40 = vector.load %arg2[%c0_22, %c0_23, %c0_24] : memref<1x16x128xf32, #tpu.memory_space<vmem>>, vector<1x16x128xf32>
      %41 = vector.shape_cast %40 : vector<1x16x128xf32> to vector<16x128xf32>
      %42 = arith.truncf %41 : vector<16x128xf32> to vector<16x128xbf16>
      %c0_25 = arith.constant 0 : index
      %c0_26 = arith.constant 0 : index
      %c0_27 = arith.constant 0 : index
      %43 = vector.load %arg3[%c0_25, %c0_26, %c0_27] : memref<1x128x128xf32, #tpu.memory_space<vmem>>, vector<1x128x128xf32>
      %44 = vector.shape_cast %43 : vector<1x128x128xf32> to vector<128x128xf32>
      %45 = arith.truncf %44 : vector<128x128xf32> to vector<128x128xbf16>
      %cst_28 = arith.constant dense<0.000000e+00> : vector<16x128xf32>
      %46 = tpu.matmul %42, %45, %cst_28 {dimension_numbers = #tpu.dot_dimension_numbers<[1], [0], [0], [1], [0, 0, 1, 1], [], []>} : vector<16x128xbf16>, vector<128x128xbf16>, vector<16x128xf32> -> vector<16x128xf32>
      %c0_29 = arith.constant 0 : index
      %c0_30 = arith.constant 0 : index
      %c0_31 = arith.constant 0 : index
      %47 = vector.load %arg4[%c0_29, %c0_30, %c0_31] : memref<1x1x128xf32, #tpu.memory_space<vmem>>, vector<1x1x128xf32>
      %48 = vector.shape_cast %47 : vector<1x1x128xf32> to vector<1x128xf32>
      %49 = vector.broadcast %48 : vector<1x128xf32> to vector<16x128xf32>
      %50 = arith.addf %46, %49 : vector<16x128xf32>
      %51 = arith.truncf %50 : vector<16x128xf32> to vector<16x128xbf16>
      %c0_32 = arith.constant 0 : index
      %c0_33 = arith.constant 0 : index
      %52 = vector.load %arg9[%c0_32, %c0_33] : memref<16x128xbf16, #tpu.memory_space<vmem>>, vector<16x128xbf16>
      tpu.vector_store %arg9[%c0_32, %c0_33], %51 {strides = array<i32>} : memref<16x128xbf16, #tpu.memory_space<vmem>>, vector<16x128xbf16>,
    } else {
    }
    %c0 = arith.constant 0 : index
    %c0_1 = arith.constant 0 : index
    %c0_2 = arith.constant 0 : index
    %3 = vector.load %arg5[%c0, %c0_1, %c0_2] : memref<1x16x16xf32, #tpu.memory_space<vmem>>, vector<1x16x16xf32>
    %4 = vector.shape_cast %3 : vector<1x16x16xf32> to vector<16x16xf32>
    %cst = arith.constant 0.000000e+00 : f32
    %5 = vector.broadcast %cst : f32 to vector<16x16xf32>
    %6 = arith.cmpf ogt, %4, %5 : vector<16x16xf32>
    %cst_3 = arith.constant 2.000000e-01 : f32
    %7 = vector.broadcast %cst_3 : f32 to vector<16x16xf32>
    %8 = arith.mulf %7, %4 : vector<16x16xf32>
    %9 = arith.select %6, %4, %8 : vector<16x16xi1>, vector<16x16xf32>
    %c0_4 = arith.constant 0 : index
    %c0_5 = arith.constant 0 : index
    %10 = vector.load %arg6[%c0_4, %c0_5] : memref<16x16xbf16, #tpu.memory_space<vmem>>, vector<16x16xbf16>
    %11 = arith.extf %10 : vector<16x16xbf16> to vector<16x16xf32>
    %cst_6 = arith.constant 0.000000e+00 : f32
    %12 = vector.broadcast %cst_6 : f32 to vector<16x16xf32>
    %13 = arith.cmpf ogt, %11, %12 : vector<16x16xf32>
    %cst_7 = arith.constant -1.000000e+04 : f32
    %14 = vector.broadcast %cst_7 : f32 to vector<16x16xf32>
    %15 = arith.select %13, %9, %14 : vector<16x16xi1>, vector<16x16xf32>
    %cst_8 = arith.constant dense<0xFF800000> : vector<16xf32>
    %16 = vector.multi_reduction <maximumf>, %15, %cst_8 [1] : vector<16x16xf32> to vector<16xf32>
    %17 = vector.shape_cast %16 : vector<16xf32> to vector<16x1xf32>
    %18 = vector.broadcast %17 : vector<16x1xf32> to vector<16x16xf32>
    %19 = arith.subf %15, %18 : vector<16x16xf32>
    %cst_9 = arith.constant -1.000000e+02 : f32
    %20 = vector.broadcast %cst_9 : f32 to vector<16x16xf32>
    %21 = arith.maximumf %19, %20 : vector<16x16xf32>
    %22 = math.exp %21 : vector<16x16xf32>
    %cst_10 = arith.constant dense<0.000000e+00> : vector<16xf32>
    %23 = vector.multi_reduction <add>, %22, %cst_10 [1] : vector<16x16xf32> to vector<16xf32>
    %24 = vector.shape_cast %23 : vector<16xf32> to vector<16x1xf32>
    %cst_11 = arith.constant 1.000000e+00 : f32
    %25 = vector.broadcast %cst_11 : f32 to vector<16x1xf32>
    %26 = arith.divf %25, %24 : vector<16x1xf32>
    %27 = vector.broadcast %26 : vector<16x1xf32> to vector<16x16xf32>
    %28 = arith.mulf %22, %27 : vector<16x16xf32>
    %29 = arith.truncf %28 : vector<16x16xf32> to vector<16x16xbf16>
    %c0_12 = arith.constant 0 : index
    %c0_13 = arith.constant 0 : index
    %30 = vector.load %arg9[%c0_12, %c0_13] : memref<16x128xbf16, #tpu.memory_space<vmem>>, vector<16x128xbf16>
    %cst_14 = arith.constant dense<0.000000e+00> : vector<16x128xf32>
    %31 = tpu.matmul %29, %30, %cst_14 {dimension_numbers = #tpu.dot_dimension_numbers<[1], [0], [0], [1], [0, 0, 1, 1], [], []>} : vector<16x16xbf16>, vector<16x128xbf16>, vector<16x128xf32> -> vector<16x128xf32>
    %cst_15 = arith.constant 0.000000e+00 : f32
    %32 = vector.broadcast %cst_15 : f32 to vector<16x128xf32>
    %33 = arith.maximumf %31, %32 : vector<16x128xf32>
    %c0_16 = arith.constant 0 : index
    %c0_17 = arith.constant 0 : index
    %c0_18 = arith.constant 0 : index
    %34 = vector.load %arg7[%c0_16, %c0_17, %c0_18] : memref<1x16x128xf32, #tpu.memory_space<vmem>>, vector<1x16x128xf32>
    %35 = vector.shape_cast %34 : vector<1x16x128xf32> to vector<16x128xf32>
    %36 = vector.shape_cast %33 : vector<16x128xf32> to vector<1x16x128xf32>
    tpu.vector_store %arg7[%c0_16, %c0_17, %c0_18], %36 {strides = array<i32>} : memref<1x16x128xf32, #tpu.memory_space<vmem>>, vector<1x16x128xf32>,
    %c0_19 = arith.constant 0 : index
    %c0_20 = arith.constant 0 : index
    %c0_21 = arith.constant 0 : index
    %37 = vector.load %arg8[%c0_19, %c0_20, %c0_21] : memref<1x16x16xf32, #tpu.memory_space<vmem>>, vector<1x16x16xf32>
    %38 = vector.shape_cast %37 : vector<1x16x16xf32> to vector<16x16xf32>
    %39 = vector.shape_cast %28 : vector<16x16xf32> to vector<1x16x16xf32>
    tpu.vector_store %arg8[%c0_19, %c0_20, %c0_21], %39 {strides = array<i32>} : memref<1x16x16xf32, #tpu.memory_space<vmem>>, vector<1x16x16xf32>,
    return
  }
  func.func @transform_0(%arg0: i32, %arg1: i32) -> (i32, i32, i32) {
    %c0_i32 = arith.constant 0 : i32
    %c0_i32_0 = arith.constant 0 : i32
    %c0_i32_1 = arith.constant 0 : i32
    return %arg0, %c0_i32, %c0_i32_0 : i32, i32, i32
  }
  func.func @transform_1(%arg0: i32, %arg1: i32) -> (i32, i32, i32) {
    %c0_i32 = arith.constant 0 : i32
    %c0_i32_0 = arith.constant 0 : i32
    %c0_i32_1 = arith.constant 0 : i32
    return %arg0, %c0_i32, %c0_i32_0 : i32, i32, i32
  }
  func.func @transform_2(%arg0: i32, %arg1: i32) -> (i32, i32, i32) {
    %c0_i32 = arith.constant 0 : i32
    %c0_i32_0 = arith.constant 0 : i32
    %c0_i32_1 = arith.constant 0 : i32
    return %arg0, %c0_i32, %c0_i32_0 : i32, i32, i32
  }
  func.func @transform_3(%arg0: i32, %arg1: i32) -> (i32, i32, i32) {
    %c0_i32 = arith.constant 0 : i32
    %c0_i32_0 = arith.constant 0 : i32
    return %arg0, %arg1, %c0_i32 : i32, i32, i32
  }
  func.func @transform_4(%arg0: i32, %arg1: i32) -> (i32, i32) {
    %c0_i32 = arith.constant 0 : i32
    %c0_i32_0 = arith.constant 0 : i32
    return %arg1, %c0_i32 : i32, i32
  }
  func.func @transform_5(%arg0: i32, %arg1: i32) -> (i32, i32, i32) {
    %c0_i32 = arith.constant 0 : i32
    %c0_i32_0 = arith.constant 0 : i32
    return %arg0, %arg1, %c0_i32 : i32, i32, i32
  }
  func.func @transform_6(%arg0: i32, %arg1: i32) -> (i32, i32, i32) {
    %c0_i32 = arith.constant 0 : i32
    %c0_i32_0 = arith.constant 0 : i32
    return %arg0, %arg1, %c0_i32 : i32, i32, i32
  }
}

</mosaic_0001>

<bundles_post_ra>
// kernel: tpu_custom_call.1
= control target key start
LH: loop header
LB: loop body
LE: loop exit
PB: predicated region body
PF: predicated region fallthrough
CT: control target
= control target key end

     0   :  { %s1610_s0 = inlined_call_operand.hbm [shape: f32[2,16,128], index: 0, kind: input, shape index: {}]   ;;  %s1611_s1 = inlined_call_operand.hbm [shape: f32[2,128,128], index: 1, kind: input, shape index: {}]   ;;  %s1612_s2 = inlined_call_operand.vmem [shape: f32[2,1,128], index: 2, kind: input, shape index: {}]   ;;  %s1613_s3 = inlined_call_operand.hbm [shape: f32[2,16,16], index: 3, kind: input, shape index: {}]   ;;  %s1614_s4 = inlined_call_operand.vmem [shape: bf16[16,16], index: 4, kind: input, shape index: {}]   ;;  %s1615_s5 = inlined_call_operand.hbm [shape: f32[2,16,128], index: 5, kind: output, shape index: {0}]   ;;  %s1616_s6 = inlined_call_operand.hbm [shape: f32[2,16,16], index: 6, kind: output, shape index: {1}]  }
   0x1   :  { %1630 = sst [smem:[#allocation22_spill]] %s1610_s0 }
   0x2   :  { %1631 = sst [smem:[#allocation23_spill]] %s1611_s1 }
   0x3   :  { %12 = vsyncpa [#allocation4], 0 }
   0x4   :  { %14 = vsyncpa [#allocation4 + $0x1], 0 }
   0x5   :  { %15 = vsyncpa [#allocation7], 0 }
   0x6   :  { %17 = vsyncpa [#allocation7 + $0x1], 0 }
   0x7   :  { %18 = vsyncpa [#allocation5], 0 }
   0x8   :  { %20 = vsyncpa [#allocation5 + $0x1], 0 }
   0x9   :  { %21 = vsyncpa [#allocation11], 0 }
   0xa   :  { %23 = vsyncpa [#allocation11 + $0x1], 0  ;;  %s1245_s21 = smov 0   ;;  %s1247_s22 = smov 0  }
   0xb   :  { %s1249_s23 = smov 0   ;;  %s1251_s24 = smov 0  }
   0xc   :  { %s1253_s25 = smov 0   ;;  %s1255_s26 = smov 0  }
   0xd LB: > { %1632 = sst [smem:[#allocation16_spill]] %s1185_s23  ;;  %s1276_s27 = sadd.s32 4294967295, %s1197_s26   ;;  %s1197_s26 = sphi %s1255_s26, %s29_s26   ;;  %s1193_s25 = sphi %s1253_s25, %s1660_s25   ;;  %s1189_s24 = sphi %s1251_s24, %s1659_s24   ;;  %s1185_s23 = sphi %s1249_s23, %s1658_s23   ;;  %s1181_s22 = sphi %s1247_s22, %s1662_s22   ;;  %s1177_s21 = sphi %s1245_s21, %s1661_s21  }
   0xe   : > { %1633 = sst [smem:[#allocation17_spill]] %s1193_s25  ;;  %s823_s28 = sadd.s32 4294967294, %s1197_s26  }
   0xf   : > { %1634 = sst [smem:[#allocation18_spill]] %s1197_s26  ;;  %s41_s29 = sadd.s32 1, %s1193_s25 }
  0x10   : > { %s48_s30 = sadd.s32 1, %s1185_s23  ;;  %p43_p0 = scmp.ge.s32.totalorder %s41_s29, 2 }
  0x11   : > { %p55_p1 = scmp.ne.s32.totalorder %s1185_s23, %s1181_s22  ;;  %p56_p2 = scmp.eq.s32.totalorder %s1197_s26, 0 }
  0x12   : > { %p61_p3 = scmp.ne.s32.totalorder %s1181_s22, %s1177_s21  ;;  %s1664_s29 = smov (%p43_p0, %s41_s29), 0 }
  0x13   : > { %1635 = sst [smem:[#allocation19_spill]] %s1664_s29  ;;  %p1288_p4 = por %p56_p2, %p55_p1 }
  0x14   : > { %p62_p5 = scmp.eq.s32.totalorder %s1276_s27, 0  ;;  %s45_s8 = ssub.s32 %s1193_s25, %s1664_s29 }
  0x15   : > { %p193_p6 = scmp.eq.s32.totalorder %s1276_s27, 1  ;;  %p46_p7 = scmp.eq.s32.totalorder %s45_s8, 0 }
  0x16   : > { %p1296_p8 = por %p62_p5, %p61_p3  ;;  %p199_p10 = scmp.eq.s32.totalorder %s823_s28, 1 }
  0x17   : > { %p1300_p9 = por %p193_p6, %p55_p1  ;;  %p925_p13 = scmp.lt.s32.totalorder %s1197_s26, 2 }
  0x18   : > { %s1637_s9 = scalar_select %p1296_p8, 1, 0 }
  0x19   : > { %s1638_s10 = scalar_select %p1300_p9, 1, 0 }
  0x1a   : > { %s1305_s11 = scalar_select %p46_p7, %s1185_s23, %s48_s30  }
  0x1b   : > { %p1307_p11 = por %p199_p10, %p61_p3  ;;  %s1314_s13 = sand.u32 1, %s1185_s23  }
  0x1c   : > { %1639 = sst [smem:[#allocation20_spill]] %s1305_s11  ;;  %p1318_p0 = pnand %p925_p13, %p1288_p4 }
  0x1d   : > { %s1640_s12 = scalar_select %p1307_p11, 1, 0 }
  0x1e   : > { %s277_s15 = sand.u32 1, %s1197_s26   ;;  %s830_s16 = sshll.u32 %s1314_s13, 7 }
  0x1f   : > { %1641 = sst [smem:[#allocation21_spill]] %s1640_s12  ;;  %s853_s17 = sshll.u32 %s1193_s25, 11 }
  0x20   : > { %s281_s18 = scalar_lea.vmem [#allocation6], %s830_s16  ;;  %s1643_s1 = sld [smem:[#allocation23_spill]] }
  0x21   : > { %s288_s19 = sshll.u32 %s281_s18, 4  ;;  %s1332_s7 = scalar_lea.sflag [#allocation7], %s277_s15  ;;  %s1330_s19 = int_to_ptr.vmem [resolvable:$true] %s288_s19 }
  0x22   : > { %p1338_p2 = pneg %p1318_p0 }
  0x26   : > { %s1328_s30 = scalar_lea.hbm %s1643_s1, %s853_s17  ;;  %s994_s18 = scalar_lea.hbm %s1643_s1, 4096 }
  0x27   : > { %s989_s8 = scalar_lea.hbm %s1328_s30, 2048  ;;  %p995_p5 = scmp.lt.u32.totalorder %s1328_s30, %s1643_s1 }
  0x28   : > { %p990_p1 = scmp.ne.s32.totalorder %s1328_s30, %s989_s8  ;;  %p996_p6 = scmp.lt.u32.totalorder %s994_s18, %s989_s8 }
  0x29   : > { %p998_p10 = scmp.lt.u32.totalorder %s989_s8, %s1328_s30 }
  0x2a   : > { %p992_p3 = pnand %p1338_p2, %p990_p1  ;;  %p997_p7 = por %p996_p6, %p995_p5 }
  0x2c   : > { %p993_p4 = pneg %p992_p3  ;;  %p999_p13 = por %p998_p10, %p997_p7 }
  0x2e   : > { %p1000_p12 = pnand %p999_p13, %p993_p4 }
  0x30   : > { %1003 = shalt.err (!%p1000_p12)
}
  0x31   : > { %s1004_s15 = scalar_lea.vmem %s1330_s19, 2048  ;;  %s1199_s16 = smov [#allocation6]  }
  0x32   : > { %p1005_p1 = scmp.ne.s32.totalorder %s1330_s19, %s1004_s15  ;;  %s1009_s17 = sshll.u32 %s1199_s16, 4  ;;  %s1010_s17 = int_to_ptr.vmem [resolvable:$false] %s1009_s17 }
  0x33   : > { %s1011_s20 = scalar_lea.vmem %s1010_s17, 4096  ;;  %p1012_p9 = scmp.lt.s32.totalorder %s1330_s19, %s1010_s17 }
  0x34   : > { %p1007_p3 = pnand %p1005_p1, %p1338_p2  ;;  %p1013_p8 = scmp.lt.s32.totalorder %s1011_s20, %s1004_s15 }
  0x36   : > { %p1008_p11 = pneg %p1007_p3  ;;  %p1014_p5 = por %p1013_p8, %p1012_p9 }
  0x38   : > { %p1015_p6 = pnand %p1014_p5, %p1008_p11 }
  0x3a   : > { %1018 = shalt.err (!%p1015_p6)
}
  0x3b   : > { %s1620_s8 = smov 128   ;;  %s1622_s18 = smov 8  }
  0x3c   : > { %914 = dma.hbm_to_vmem [thread:$0]  (!%p1318_p0), %s1328_s30, 2048, %s1330_s19, %s1332_s7, %s1620_s8, %s1620_s8, %s1622_s18  }
  0x3d   : > { %p836_p8 = scmp.ge.s32.totalorder %s1197_s26, 1  ;;  %p325_p9 = scmp.lt.s32.totalorder %s1197_s26, 3 }
  0x3e   : > { %s1629_s15 = sshll.u32 %s1314_s13, 4  ;;  %s852_s16 = sshll.u32 %s1193_s25, 8 }
  0x3f   : > { %p1367_p11 = pnand %p836_p8, %p325_p9  ;;  %s1646_s0 = sld [smem:[#allocation22_spill]] }
  0x40   : > { %s260_s11 = scalar_lea.vmem [#allocation3], %s1629_s15  ;;  %s1385_s18 = scalar_lea.hbm %s1613_s3, %s852_s16 }
  0x41   : > { %s1645_s28 = scalar_select %p1367_p11, 1, 0 }
  0x42   : > { %s267_s19 = sshll.u32 %s260_s11, 4  ;;  %s257_s25 = scalar_lea.sflag [#allocation4], %s1314_s13  ;;  %s1380_s19 = int_to_ptr.vmem [resolvable:$true] %s267_s19 }
  0x45   : > { %s1376_s1 = scalar_lea.hbm %s1646_s0, %s852_s16  ;;  %s1024_s26 = scalar_lea.hbm %s1646_s0, 512 }
  0x46   : > { %s1019_s23 = scalar_lea.hbm %s1376_s1, 256  ;;  %p1025_p10 = scmp.lt.u32.totalorder %s1376_s1, %s1646_s0 }
  0x47   : > { %p1020_p12 = scmp.ne.s32.totalorder %s1376_s1, %s1019_s23  ;;  %p1026_p13 = scmp.lt.u32.totalorder %s1024_s26, %s1019_s23 }
  0x48   : > { %p1028_p3 = scmp.lt.u32.totalorder %s1019_s23, %s1376_s1 }
  0x49   : > { %p1022_p4 = pnand %p1020_p12, %p1338_p2  ;;  %p1027_p1 = por %p1026_p13, %p1025_p10 }
  0x4b   : > { %p1023_p7 = pneg %p1022_p4  ;;  %p1029_p5 = por %p1028_p3, %p1027_p1 }
  0x4d   : > { %p1030_p6 = pnand %p1029_p5, %p1023_p7 }
  0x4f   : > { %1033 = shalt.err (!%p1030_p6)
}
  0x50   : > { %s1034_s11 = scalar_lea.vmem %s1380_s19, 256  ;;  %s1202_s8 = smov [#allocation3]  }
  0x51   : > { %p1035_p8 = scmp.ne.s32.totalorder %s1380_s19, %s1034_s11  ;;  %s1039_s16 = sshll.u32 %s1202_s8, 4  ;;  %s1040_s16 = int_to_ptr.vmem [resolvable:$false] %s1039_s16 }
  0x52   : > { %s1041_s12 = scalar_lea.vmem %s1040_s16, 512  ;;  %p1042_p4 = scmp.lt.s32.totalorder %s1380_s19, %s1040_s16 }
  0x53   : > { %p1037_p9 = pnand %p1035_p8, %p1338_p2  ;;  %p1043_p11 = scmp.lt.s32.totalorder %s1041_s12, %s1034_s11 }
  0x55   : > { %p1038_p12 = pneg %p1037_p9  ;;  %p1044_p10 = por %p1043_p11, %p1042_p4 }
  0x57   : > { %p1045_p13 = pnand %p1044_p10, %p1038_p12 }
  0x59   : > { %1048 = shalt.err (!%p1045_p13)
}
  0x5a   : > { %s1647_s23 = smov 8   ;;  %s1648_s26 = smov 128  }
  0x5b   : > { %911 = dma.hbm_to_vmem [thread:$0]  (!%p1318_p0), %s1376_s1, 256, %s1380_s19, %s257_s25, %s1648_s26, %s1648_s26, %s1647_s23  }
  0x5c   : > { %s1649_s15 = sshll.u32 %s1314_s13, 4  ;;  %s1049_s20 = scalar_lea.hbm %s1385_s18, 256 }
  0x5d   : > { %s308_s30 = scalar_lea.vmem [#allocation8], %s1649_s15  ;;  %p1050_p11 = scmp.ne.s32.totalorder %s1385_s18, %s1049_s20 }
  0x5e   : > { %s317_s17 = sshll.u32 %s308_s30, 4  ;;  %s1054_s16 = scalar_lea.hbm %s1613_s3, 512  ;;  %s1416_s17 = int_to_ptr.vmem [resolvable:$true] %s317_s17 }
  0x5f   : > { %p1052_p7 = pnand %p1050_p11, %p1338_p2  ;;  %p1055_p3 = scmp.lt.u32.totalorder %s1385_s18, %s1613_s3 }
  0x60   : > { %p1056_p5 = scmp.lt.u32.totalorder %s1054_s16, %s1049_s20  ;;  %p1058_p8 = scmp.lt.u32.totalorder %s1049_s20, %s1385_s18 }
  0x61   : > { %p1053_p1 = pneg %p1052_p7 }
  0x62   : > { %p1057_p6 = por %p1056_p5, %p1055_p3 }
  0x64   : > { %p1059_p9 = por %p1058_p8, %p1057_p6 }
  0x66   : > { %p1060_p12 = pnand %p1059_p9, %p1053_p1 }
  0x68   : > { %1063 = shalt.err (!%p1060_p12)
}
  0x69   : > { %s1064_s1 = scalar_lea.vmem %s1416_s17, 256  ;;  %s1203_s25 = smov [#allocation8]  }
  0x6a   : > { %p1065_p4 = scmp.ne.s32.totalorder %s1416_s17, %s1064_s1  ;;  %s1069_s13 = sshll.u32 %s1203_s25, 4  ;;  %s1070_s13 = int_to_ptr.vmem [resolvable:$false] %s1069_s13 }
  0x6b   : > { %s1071_s0 = scalar_lea.vmem %s1070_s13, 512  ;;  %p1072_p11 = scmp.lt.s32.totalorder %s1416_s17, %s1070_s13 }
  0x6c   : > { %p1067_p10 = pnand %p1065_p4, %p1338_p2  ;;  %p1073_p7 = scmp.lt.s32.totalorder %s1071_s0, %s1064_s1 }
  0x6e   : > { %p1068_p13 = pneg %p1067_p10  ;;  %p1074_p3 = por %p1073_p7, %p1072_p11 }
  0x70   : > { %p1075_p5 = pnand %p1074_p3, %p1068_p13 }
  0x72   : > { %1078 = shalt.err (!%p1075_p5)
}
  0x73   : > { %917 = dma.hbm_to_vmem [thread:$0]  (!%p1318_p0), %s1385_s18, 256, %s1416_s17, %s1332_s7, %s1648_s26, %s1648_s26, %s1647_s23  }
  0x74   : > { %p1650_p2 = scmp.ne.s32.totalorder %s1645_s28, 0 }
  0x75   : > { %s1446_s29 = sand.u32 (!%p1650_p2), 1, %s1181_s22   ;;  %p1651_p1 = scmp.ne.s32.totalorder (!%p1650_p2), %s1637_s9, 0 }
  0x76   : > { %329 = sbr.rel (%p1650_p2) target bundleno = 687 (0x2af), region = 40  ;;  %s1449_s19 = sshll.u32 (!%p1650_p2), %s1446_s29, 4 }
  0x77   : > { %s332_s14 = scalar_lea.sflag (!%p1650_p2), [#allocation4], %s1446_s29  ;;  %s335_s15 = scalar_lea.vmem (!%p1650_p2), [#allocation3], %s1449_s19 }
  0x7d   : > { %1160 = dma.done.wait (%p1651_p1), %s332_s14, 256  }
  0x7e   : > { %1162 = vsyncadd (%p1651_p1), %s332_s14, 4294967040  ;;  %s340_s7 = sand.u32 1, %s1276_s27   ;;  %s838_s18 = sshll.u32 %s1446_s29, 7 }
  0x7f   : > { %s341_s28 = scalar_lea.sflag [#allocation7], %s340_s7  ;;  %s1459_s23 = scalar_lea.vmem [#allocation6], %s838_s18 }
  0x80   : > { %1164 = dma.done.wait (%p1651_p1), %s341_s28, 2304  }
  0x81   : > { %1166 = vsyncadd (%p1651_p1), %s341_s28, 4294964992  ;;  %v1204_v0 = vmov 0.0   ;;  %vm1205_vm0 = vmmov 0   ;;  %s353_s27 = scalar_lea.vmem [#allocation8], %s1449_s19  ;;  %v858_v2 = vld [vmem:[%s1614_s4] sm:$0xff]   ;;  %v426_v7 = vld [vmem:[%s1459_s23 + $0x8] sm:$0xff] }
  0x82   : > { %872 = vmatprep.subr.bf16.mxu0 %v1204_v0  ;;  %888 = vmatprep.mubr.msk.bf16.mxu0 %vm1205_vm0, %v1204_v0  ;;  %v499_v1 = vld [vmem:[%s353_s27] sm:$0xff]  ;;  %v500_v3 = vld [vmem:[%s353_s27 + $0x8] sm:$0xff]  ;;  %v859_v5 = vunpack.c.l.bf16 %v858_v2  ;;  %vm515_vm3 = vcmask 130048   ;;  %v860_v9 = vunpack.c.h.bf16 %v858_v2  ;;  %p405_p0 = scmp.lt.s32.totalorder %s1189_s24, 1  ;;  %s404_s8 = scalar_lea.vmem [#allocation10], %s1449_s19 }
  0x83   : > { %892 = vmatprep.subr.bf16.mxu1 %v1204_v0  ;;  %894 = vmatprep.mubr.msk.bf16.mxu1 %vm1205_vm0, %v1204_v0  ;;  %vm501_vm1 = vcmp.gt.f32.partialorder %v499_v1, 0.0  ;;  %v503_v4 = vmul.f32 0.2, %v499_v1  ;;  %vm502_vm2 = vcmp.gt.f32.partialorder %v500_v3, 0.0  ;;  %v425_v6 = vld [vmem:[%s1459_s23] sm:$0xff]  ;;  %v427_v11 = vld [vmem:[%s1459_s23 + $0x10] sm:$0xff] }
  0x84   : > { %v504_v8 = vmul.f32 0.2, %v500_v3  ;;  %v441_v10 = vpack.c.bf16 %v426_v7, %v425_v6  ;;  %v428_v12 = vld [vmem:[%s1459_s23 + $0x18] sm:$0xff]  ;;  %vm511_vm4 = vcmp.gt.f32.partialorder %v859_v5, 0.0  ;;  %vm512_vm5 = vcmp.gt.f32.partialorder %v860_v9, 0.0  ;;  %v429_v19 = vld [vmem:[%s1459_s23 + $0x20] sm:$0xff] }
  0x85   : > { %v505_v13 = vsel %vm501_vm1, %v499_v1, %v503_v4  ;;  %v442_v16 = vpack.c.bf16 %v428_v12, %v427_v11  ;;  %v430_v20 = vld [vmem:[%s1459_s23 + $0x28] sm:$0xff]  ;;  %v431_v23 = vld [vmem:[%s1459_s23 + $0x30] sm:$0xff]  ;;  %v432_v24 = vld [vmem:[%s1459_s23 + $0x38] sm:$0xff]  ;;  %s406_s30 = scalar_select %p405_p0, %s1189_s24, 1 }
  0x86   : > { %v513_v14 = vsel %vm511_vm4, %v505_v13, -10000.0  ;;  %v506_v15 = vsel %vm502_vm2, %v500_v3, %v504_v8  ;;  %873 = vmatpush3.bf16.msra.mxu0 %v441_v10  ;;  %v443_v22 = vpack.c.bf16 %v430_v20, %v429_v19  ;;  %v444_v25 = vpack.c.bf16 %v432_v24, %v431_v23  ;;  %v433_v26 = vld [vmem:[%s1459_s23 + $0x40] sm:$0xff]  ;;  %v434_v27 = vld [vmem:[%s1459_s23 + $0x48] sm:$0xff]  ;;  %v435_v29 = vld [vmem:[%s1459_s23 + $0x50] sm:$0xff]  ;;  %s855_s16 = sshll.u32 %s1189_s24, 8  ;;  %s633_s13 = sshll.u32 %s404_s8, 4  ;;  %s1521_s13 = int_to_ptr.vmem [resolvable:$true] %s633_s13 }
  0x87   : > { %v516_v17 = vsel %vm515_vm3, %v513_v14, -inf  ;;  %v514_v18 = vsel %vm512_vm5, %v506_v15, -10000.0  ;;  %874 = vmatprep.subr.bf16.mxu0 %v1204_v0  ;;  %v445_v28 = vpack.c.bf16 %v434_v27, %v433_v26  ;;  %v436_v30 = vld [vmem:[%s1459_s23 + $0x58] sm:$0xff]  ;;  %v437_v32 = vld [vmem:[%s1459_s23 + $0x60] sm:$0xff]  ;;  %v438_v33 = vld [vmem:[%s1459_s23 + $0x68] sm:$0xff]  ;;  %s407_s11 = scalar_lea.vmem %s1612_s2, %s406_s30  ;;  %s1519_s25 = scalar_lea.hbm %s1616_s6, %s855_s16 }
  0x88   : > { %517 = vmax.xlane.f32.xlu0 %v516_v17  ;;  %v519_v21 = vsel %vm515_vm3, %v514_v18, -inf  ;;  %v446_v31 = vpack.c.bf16 %v436_v30, %v435_v29  ;;  %v447_v34 = vpack.c.bf16 %v438_v33, %v437_v32  ;;  %v439_v35 = vld [vmem:[%s1459_s23 + $0x70] sm:$0xff]  ;;  %v440_v36 = vld [vmem:[%s1459_s23 + $0x78] sm:$0xff]  ;;  %v842_v53 = vld [vmem:[%s407_s11] ss:$0 sm:$0xff]  ;;  %s600_s0 = scalar_lea.sflag [#allocation11], %s1446_s29 }
  0x89   : > { %v448_v37 = vpack.c.bf16 %v440_v36, %v439_v35  ;;  %v422_v38 = vld [vmem:[%s335_s15] sm:$0xff]  ;;  %v423_v39 = vld [vmem:[%s335_s15 + $0x8] sm:$0xff]  ;;  %s1079_s14 = scalar_lea.vmem %s1521_s13, 256  ;;  %p1652_p8 = scmp.ne.s32.totalorder %s1638_s10, 0 }
  0x8a   : > { %875 = vmatpush3.bf16.msra.mxu0 %v442_v16  ;;  %v424_v40 = vpack.c.bf16 %v423_v39, %v422_v38  ;;  %p1080_p6 = scmp.ne.s32.totalorder %s1521_s13, %s1079_s14  ;;  %s1206_s15 = smov [#allocation10]  }
  0x8b   : > { %876 = vmatprep.subr.bf16.mxu0 %v1204_v0  ;;  %s1083_s7 = sshll.u32 %s1206_s15, 4  ;;  %s1084_s7 = int_to_ptr.vmem [resolvable:$false] %s1083_s7 }
  0x8c   : > { %520 = vmax.xlane.f32.xlu0 %v519_v21  ;;  %p1081_p9 = pnand %p1080_p6, %p1652_p8  ;;  %s1085_s18 = scalar_lea.vmem %s1084_s7, 512 }
  0x8d   : > { %p1086_p4 = scmp.lt.s32.totalorder %s1521_s13, %s1084_s7  ;;  %p1087_p10 = scmp.lt.s32.totalorder %s1085_s18, %s1079_s14 }
  0x8e   : > { %877 = vmatpush3.bf16.msra.mxu0 %v443_v22  ;;  %p1082_p12 = pneg %p1081_p9 }
  0x8f   : > { %878 = vmatprep.subr.bf16.mxu0 %v1204_v0  ;;  %p1088_p13 = por %p1087_p10, %p1086_p4 }
  0x91   : > { %p1089_p11 = pnand %p1088_p13, %p1082_p12 }
  0x92   : > { %879 = vmatpush3.bf16.msra.mxu0 %v444_v25 }
  0x93   : > { %880 = vmatprep.subr.bf16.mxu0 %v1204_v0 }
  0x96   : > { %881 = vmatpush3.bf16.msra.mxu0 %v445_v28 }
  0x97   : > { %882 = vmatprep.subr.bf16.mxu0 %v1204_v0 }
  0x9a   : > { %883 = vmatpush3.bf16.msra.mxu0 %v446_v31 }
  0x9b   : > { %884 = vmatprep.subr.bf16.mxu0 %v1204_v0 }
  0x9e   : > { %885 = vmatpush3.bf16.msra.mxu0 %v447_v34 }
  0x9f   : > { %886 = vmatprep.subr.bf16.mxu0 %v1204_v0 }
  0xa2   : > { %887 = vmatpush3.bf16.msra.mxu0 %v448_v37 }
  0xa5   : > { %889 = vmatmul.mubr.bf16.vlgmr.msra.gmra.mrb[0].mxu0 %v424_v40 }
 0x115   : > { %v518_v41 = vpop.xlane.xlu0 %517 }
 0x116   : > { %v522_v42 = vsub.f32 %v513_v14, %v518_v41 }
 0x118   : > { %v524_v43 = vmax.f32 %v522_v42, -100.0 }
 0x119   : > { %v521_v44 = vpop.xlane.xlu0 %520 }
 0x11a   : > { %v526_v45 = vmul.f32 1.442695, %v524_v43  ;;  %v523_v46 = vsub.f32 %v514_v18, %v521_v44 }
 0x11c   : > { %981 = vpow2.f32 %v526_v45  ;;  %v525_v47 = vmax.f32 %v523_v46, -100.0 }
 0x11e   : > { %v528_v48 = vmul.f32 1.442695, %v525_v47 }
 0x120   : > { %983 = vpow2.f32 %v528_v48 }
 0x126   : > { %v982_v49 = vpop.eup %981 }
 0x127   : > { %v530_v50 = vsel %vm515_vm3, %v982_v49, 0.0 }
 0x128   : > { %531 = vadd.xlane.f32.xlu1 %v530_v50 }
 0x12a   : > { %v984_v51 = vpop.eup %983 }
 0x12b   : > { %v533_v52 = vsel %vm515_vm3, %v984_v51, 0.0 }
 0x12c   : > { %534 = vadd.xlane.f32.xlu1 %v533_v52 }
 0x178   : > { %v490_v54 = vpop.f32.mrb[0].mxu0 }
 0x179   : > { %v491_v55 = vadd.f32 %v842_v53, %v490_v54  ;;  %v890_v56 = vpop.f32.mrb[1].mxu0 }
 0x17a   : > { %v493_v57 = vpop.f32.mrb[2].mxu0 }
 0x17b   : > { %v494_v58 = vadd.f32 %v842_v53, %v493_v57  ;;  %v891_v59 = vpop.f32.mrb[3].mxu0 }
 0x17d   : > { %v497_v60 = vpack.c.bf16 %v494_v58, %v491_v55 }
 0x17f   : > { %893 = vmatpush3.bf16.msra.mxu1 %v497_v60 }
 0x1b5   : > { %v532_v61 = vpop.xlane.xlu1 %531 }
 0x1b6   : > { %985 = vrcp.f32 %v532_v61 }
 0x1b9   : > { %v535_v62 = vpop.xlane.xlu1 %534 }
 0x1ba   : > { %987 = vrcp.f32 %v535_v62 }
 0x1c0   : > { %v986_v63 = vpop.eup %985 }
 0x1c1   : > { %v540_v0 = vmul.f32 %v986_v63, %v982_v49 }
 0x1c3   : > { %592 = vst.msk [vmem:[%s404_s8] sm:$0xff] %vm515_vm3, %v540_v0 }
 0x1c4   : > { %v988_v1 = vpop.eup %987 }
 0x1c5   : > { %v541_v2 = vmul.f32 %v988_v1, %v984_v51 }
 0x1c7   : > { %v542_v3 = vpack.c.bf16 %v541_v2, %v540_v0  ;;  %593 = vst.msk [vmem:[%s404_s8 + $0x8] sm:$0xff] %vm515_vm3, %v541_v2 }
 0x1c9   : > { %895 = vmatmul.mubr.msk.bf16.vlgmr.msra.gmra.mrb[0].mxu1 %vm515_vm3, %v542_v3 }
 0x1ca   : > { %1092 = shalt.err (!%p1089_p11)
}
 0x1cb   : > { %s1093_s28 = scalar_lea.hbm %s1519_s25, 256  ;;  %s1097_s26 = scalar_lea.hbm %s1616_s6, 512 }
 0x1cc   : > { %p1094_p7 = scmp.ne.s32.totalorder %s1519_s25, %s1093_s28  ;;  %p1098_p2 = scmp.lt.u32.totalorder %s1519_s25, %s1616_s6 }
 0x1cd   : > { %p1099_p1 = scmp.lt.u32.totalorder %s1097_s26, %s1093_s28  ;;  %p1101_p6 = scmp.lt.u32.totalorder %s1093_s28, %s1519_s25 }
 0x1ce   : > { %p1095_p3 = pnand %p1094_p7, %p1652_p8 }
 0x1cf   : > { %p1100_p0 = por %p1099_p1, %p1098_p2 }
 0x1d0   : > { %p1096_p5 = pneg %p1095_p3 }
 0x1d1   : > { %p1102_p9 = por %p1101_p6, %p1100_p0 }
 0x1d3   : > { %p1103_p12 = pnand %p1102_p9, %p1096_p5 }
 0x1d5   : > { %1106 = shalt.err (!%p1103_p12)
}
 0x1d6   : > { %s1207_s17 = smov 128   ;;  %s1208_s20 = smov 8  }
 0x1d7   : > { %905 = dma.vmem_to_hbm [thread:$0]  (%p1652_p8), %s1521_s13, 256, %s1519_s25, %s600_s0, %s1207_s17, %s1207_s17, %s1208_s20  }
 0x1d8   : > { %s397_s11 = scalar_lea.vmem [#allocation9], %s1449_s19  ;;  %s1558_s25 = scalar_lea.hbm %s1615_s5, %s855_s16 }
 0x1d9   : > { %s615_s8 = sshll.u32 %s397_s11, 4  ;;  %s595_s19 = scalar_lea.sflag [#allocation5], %s1446_s29  ;;  %s1551_s8 = int_to_ptr.vmem [resolvable:$true] %s615_s8 }
 0x1da   : > { %s1107_s13 = scalar_lea.vmem %s1551_s8, 256  ;;  %s1209_s0 = smov [#allocation9]  }
 0x1db   : > { %p1108_p4 = scmp.ne.s32.totalorder %s1551_s8, %s1107_s13  ;;  %s1111_s14 = sshll.u32 %s1209_s0, 4  ;;  %s1112_s14 = int_to_ptr.vmem [resolvable:$false] %s1111_s14 }
 0x1dc   : > { %s1113_s15 = scalar_lea.vmem %s1112_s14, 512  ;;  %p1114_p11 = scmp.lt.s32.totalorder %s1551_s8, %s1112_s14 }
 0x1dd   : > { %p1109_p10 = pnand %p1108_p4, %p1652_p8  ;;  %p1115_p7 = scmp.lt.s32.totalorder %s1113_s15, %s1107_s13 }
 0x1df   : > { %p1110_p13 = pneg %p1109_p10  ;;  %p1116_p3 = por %p1115_p7, %p1114_p11 }
 0x1e1   : > { %p1117_p5 = pnand %p1116_p3, %p1110_p13 }
 0x29c   : > { %v581_v4 = vpop.f32.mrb[0].mxu1 }
 0x29d   : > { %v588_v5 = vmax.f32 %v581_v4, 0.0  ;;  %v896_v6 = vpop.f32.mrb[1].mxu1 }
 0x29e   : > { %v584_v7 = vpop.f32.mrb[2].mxu1 }
 0x29f   : > { %590 = vst [vmem:[%s397_s11] sm:$0xff] %v588_v5  ;;  %v589_v8 = vmax.f32 %v584_v7, 0.0  ;;  %v897_v9 = vpop.f32.mrb[3].mxu1 }
 0x2a1   : > { %591 = vst [vmem:[%s397_s11 + $0x8] sm:$0xff] %v589_v8 }
 0x2a2   : > { %1120 = shalt.err (!%p1117_p5)
}
 0x2a3   : > { %s1121_s24 = scalar_lea.hbm %s1558_s25, 256  ;;  %s1125_s18 = scalar_lea.hbm %s1615_s5, 512 }
 0x2a4   : > { %p1122_p2 = scmp.ne.s32.totalorder %s1558_s25, %s1121_s24  ;;  %p1126_p6 = scmp.lt.u32.totalorder %s1558_s25, %s1615_s5 }
 0x2a5   : > { %p1127_p9 = scmp.lt.u32.totalorder %s1125_s18, %s1121_s24  ;;  %p1129_p4 = scmp.lt.u32.totalorder %s1121_s24, %s1558_s25 }
 0x2a6   : > { %p1123_p1 = pnand %p1122_p2, %p1652_p8 }
 0x2a7   : > { %p1128_p12 = por %p1127_p9, %p1126_p6 }
 0x2a8   : > { %p1124_p0 = pneg %p1123_p1 }
 0x2a9   : > { %p1130_p10 = por %p1129_p4, %p1128_p12 }
 0x2ab   : > { %p1131_p13 = pnand %p1130_p10, %p1124_p0 }
 0x2ad   : > { %1134 = shalt.err (!%p1131_p13)
}
 0x2ae   : > { %904 = dma.vmem_to_hbm [thread:$0]  (%p1652_p8), %s1551_s8, 256, %s1558_s25, %s595_s19, %s1207_s17, %s1207_s17, %s1208_s20  }
 0x2af PF: > { %s1653_s27 = sld [smem:[#allocation21_spill]]  ;;  %s1654_s26 = sld [smem:[#allocation18_spill]] }
 0x2b0   : > { %s648_s9 = sand.u32 1, %s1177_s21  }
 0x2b1   : > { %s649_s30 = scalar_lea.sflag [#allocation5], %s648_s9 }
 0x2b5   : > { %p1655_p11 = scmp.ne.s32.totalorder %s1653_s27, 0  ;;  %p1656_p7 = scmp.ge.s32.totalorder %s1654_s26, 2 }
 0x2b7   : > { %p919_p3 = pnand %p1656_p7, %p1655_p11 }
 0x2b9   : > { %1168 = dma.done.wait (!%p919_p3), %s649_s30, 256  }
 0x2ba   : > { %1170 = vsyncadd (!%p919_p3), %s649_s30, 4294967040  ;;  %s658_s10 = scalar_lea.sflag [#allocation11], %s648_s9 }
 0x2bb   : > { %1172 = dma.done.wait (!%p919_p3), %s658_s10, 256  }
 0x2bc   : > { %1174 = vsyncadd (!%p919_p3), %s658_s10, 4294967040  ;;  %s29_s26 = sadd.s32 1, %s1654_s26   ;;  %s1657_s29 = sld [smem:[#allocation16_spill]] }
 0x2bd   : > { %p26_p5 = scmp.ge.s32.totalorder %s29_s26, 4   ;;  %s1658_s23 = sld [smem:[#allocation20_spill]] }
 0x2be   : > { %s1659_s24 = sld [smem:[#allocation17_spill]]  ;;  %s1660_s25 = sld [smem:[#allocation19_spill]] }
 0x2bf   : > { %s1661_s21 = smov %s1181_s22  ;;  %28 = sbr.rel (!%p26_p5) target bundleno = 13 (0xd), region = 136 }
 0x2c2   : > { %s1662_s22 = smov %s1657_s29 }
 0x2c6   :  { %663 = vsyncpa [#allocation4], 1 }
 0x2c7   :  { %665 = vsyncpa [#allocation4 + $0x1], 1 }
 0x2c8   :  { %666 = vsyncpa [#allocation7], 1 }
 0x2c9   :  { %668 = vsyncpa [#allocation7 + $0x1], 1 }
 0x2ca   :  { %669 = vsyncpa [#allocation5], 1 }
 0x2cb   :  { %671 = vsyncpa [#allocation5 + $0x1], 1 }
 0x2cc   :  { %672 = vsyncpa [#allocation11], 1 }
 0x2cd   :  { %674 = vsyncpa [#allocation11 + $0x1], 1 }

</bundles_post_ra>
